<compile_context>
chip_gen: v6e
topology: v6e:2x2x1
jax: 0.10.0
libtpu: 0.0.40
codegen_flags: <defaults>
</compile_context>

<pallas_src>
import jax
import jax.numpy as jnp
from jax.experimental import pallas as pl
from jax.experimental.pallas import tpu as pltpu


def _prompt_kernel(ctx_ref, delta_ref, prefix_ref, suffix_ref, o_ref):
    # ctx_ref / delta_ref : (4, n_ctx, dim)       -- same block every grid step
    # prefix_ref          : (tc, dim)             -- this block's SOS embeddings
    # suffix_ref          : (tc, L_suf, dim)      -- this block's suffix tokens
    # o_ref               : (tc, 4, total, dim)   -- this block's output slab
    tc, four, _, dim = o_ref.shape
    n_ctx = ctx_ref.shape[1]
    l_suf = suffix_ref.shape[1]

    # One VPU add; everything else is broadcast + direct slice stores
    # (no concatenate -> no staged VMEM slab, no doubled vst traffic).
    c = ctx_ref[...] + delta_ref[...]                              # (4, n_ctx, dim)

    o_ref[:, :, 0:1, :] = jnp.broadcast_to(
        prefix_ref[...][:, None, None, :], (tc, four, 1, dim))
    o_ref[:, :, 1:1 + n_ctx, :] = jnp.broadcast_to(
        c[None], (tc, four, n_ctx, dim))
    o_ref[:, :, 1 + n_ctx:, :] = jnp.broadcast_to(
        suffix_ref[...][:, None, :, :], (tc, four, l_suf, dim))


def _round_up(x, m):
    return ((x + m - 1) // m) * m


def _tpu_generation_info():
    """(vmem_capacity_bytes, num_tensorcores) with safe fallbacks."""
    vmem_bytes = 128 << 20
    try:
        info = pltpu.get_tpu_info()
        vmem_bytes = int(getattr(info, "vmem_capacity_bytes", vmem_bytes))
    except Exception:
        pass
    # v7x has 64 MiB VMEM per TC and 2 TCs/chip; v5e/v6e have 128 MiB, 1 TC.
    num_cores = 2 if vmem_bytes <= (64 << 20) else 1
    return vmem_bytes, num_cores


def _choose_class_block(n_cls, four, n_ctx, l_suf, dim, itemsize,
                        budget_bytes, num_cores):
    """Pick tc (multiple of 8), padded class count, and block count."""
    total = 1 + n_ctx + l_suf
    # Per-class bytes in flight, double-buffered: output slab + prefix row + suffix.
    per_class = 2 * itemsize * dim * (four * total + 1 + l_suf)
    max_tc = max(8, (budget_bytes // max(per_class, 1)) // 8 * 8)

    if num_cores <= 1:
        # Single TensorCore: biggest block that fits (1-step grid if possible).
        tc = min(_round_up(n_cls, 8), max_tc)
    else:
        # 2 TCs: aim for an even number of blocks (balanced core sharding).
        tc = min(_round_up(pl.cdiv(n_cls, 2), 8), max_tc)

    n_cls_pad = _round_up(n_cls, tc)
    n_blocks = n_cls_pad // tc
    if num_cores >= 2:
        while n_blocks % 2 == 1 and n_blocks > 1 and tc > 8:
            tc -= 8
            n_cls_pad = _round_up(n_cls, tc)
            n_blocks = n_cls_pad // tc
    return tc, n_cls_pad, n_blocks


def prompt_learner_forward(ctx, delta, token_prefix, token_suffix):
    """Pallas implementation of PromptLearner.forward (class_token_position='end').

    ctx          : (4, n_ctx, dim)
    delta ("out"): (4, n_ctx, dim)
    token_prefix : (n_cls, 1, dim)
    token_suffix : (n_cls, L_suf, dim)
    returns      : (n_cls, 4, 1 + n_ctx + L_suf, dim)   (dtype of ctx passed through)
    """
    four, n_ctx, dim = ctx.shape
    n_cls = token_prefix.shape[0]
    l_suf = token_suffix.shape[1]
    total = 1 + n_ctx + l_suf
    dtype = ctx.dtype
    itemsize = jnp.dtype(dtype).itemsize

    vmem_capacity, num_cores = _tpu_generation_info()
    if vmem_capacity <= (64 << 20):        # v7x
        budget_bytes = 20 << 20
    else:                                  # v5e / v6e
        budget_bytes = 80 << 20

    tc, n_cls_pad, n_blocks = _choose_class_block(
        n_cls, four, n_ctx, l_suf, dim, itemsize, budget_bytes, num_cores)

    # Dense prefix tile: squeeze the singleton token axis (avoids tc fragmented
    # 1-row / 8-sublane-padded tiles per class).
    prefix2d = token_prefix.reshape(n_cls, dim)
    suffix = token_suffix
    if n_cls_pad != n_cls:
        pad = n_cls_pad - n_cls
        prefix2d = jnp.pad(prefix2d, ((0, pad), (0, 0)))
        suffix = jnp.pad(suffix, ((0, pad), (0, 0), (0, 0)))

    # VMEM estimate from the real (double-buffered) block sizes.
    out_block = tc * four * total * dim * itemsize
    pre_block = tc * dim * itemsize
    suf_block = tc * l_suf * dim * itemsize
    ctx_block = four * n_ctx * dim * itemsize
    vmem_est = 2 * (out_block + pre_block + suf_block + 2 * ctx_block) + (2 << 20)
    vmem_limit = int(min(max(vmem_est, 16 << 20), (vmem_capacity * 3) // 4))

    grid_spec = pltpu.PrefetchScalarGridSpec(
        num_scalar_prefetch=0,
        grid=(n_blocks,),
        in_specs=[
            pl.BlockSpec((four, n_ctx, dim), lambda i: (0, 0, 0)),   # ctx (constant)
            pl.BlockSpec((four, n_ctx, dim), lambda i: (0, 0, 0)),   # delta (constant)
            pl.BlockSpec((tc, dim), lambda i: (i, 0)),               # prefix block
            pl.BlockSpec((tc, l_suf, dim), lambda i: (i, 0, 0)),     # suffix block
        ],
        out_specs=pl.BlockSpec((tc, four, total, dim), lambda i: (i, 0, 0, 0)),
    )

    out = pl.pallas_call(
        _prompt_kernel,
        out_shape=jax.ShapeDtypeStruct((n_cls_pad, four, total, dim), dtype),
        grid_spec=grid_spec,
        compiler_params=pltpu.CompilerParams(
            dimension_semantics=("parallel",),
            vmem_limit_bytes=vmem_limit,
        ),
    )(ctx, delta, prefix2d, suffix)

    if n_cls_pad != n_cls:
        out = out[:n_cls]
    return out


def prompt_learner_reference(ctx, delta, token_prefix, token_suffix):
    """Pure-JAX reference mirroring the PyTorch forward."""
    n_cls = token_prefix.shape[0]
    c = ctx + delta                                               # (4, n_ctx, dim)
    c = jnp.broadcast_to(c[None], (n_cls,) + c.shape)             # (n_cls,4,n_ctx,dim)
    pre = jnp.broadcast_to(token_prefix[:, None, :, :],
                           (n_cls, c.shape[1], 1, c.shape[-1]))
    suf = jnp.broadcast_to(token_suffix[:, None, :, :],
                           (n_cls, c.shape[1], token_suffix.shape[1], c.shape[-1]))
    return jnp.concatenate([pre, c, suf], axis=2)


if __name__ == "__main__":
    # Small, CLIP-like synthetic shapes.
    n_cls = 8        # number of classes
    n_ctx = 8        # number of context tokens
    ctx_dim = 128    # embedding dim (lane-aligned)
    seq_len = 16     # synthetic tokenized length -> L_suf = seq_len - 1 - n_ctx
    l_suf = seq_len - 1 - n_ctx
    dtype = jnp.float32

    key = jax.random.PRNGKey(0)
    k_ctx, k_out, k_emb = jax.random.split(key, 3)

    # nn.init.normal_(ctx_vectors, std=0.02)
    ctx = (0.02 * jax.random.normal(k_ctx, (4, n_ctx, ctx_dim))).astype(dtype)
    # TODO(synk): the original docstring says `out` is (4, n_ctx//2, dim), which would not
    # broadcast-add against (4, n_ctx, dim); we use the broadcast-compatible shape.
    delta = (0.02 * jax.random.normal(k_out, (4, n_ctx, ctx_dim))).astype(dtype)

    # Synthetic token embeddings standing in for clip_model.token_embedding(tokenized_prompts).
    # TODO(synk): real CLIP tokenizer/embedding table not reproducible in-script; use random embeddings.
    embedding = jax.random.normal(k_emb, (n_cls, seq_len, ctx_dim)).astype(dtype)
    token_prefix = embedding[:, :1, :]              # (n_cls, 1, dim)
    token_suffix = embedding[:, 1 + n_ctx:, :]      # (n_cls, L_suf, dim)

    prompts = prompt_learner_forward(ctx, delta, token_prefix, token_suffix)
    prompts = jax.block_until_ready(prompts)

    ref = prompt_learner_reference(ctx, delta, token_prefix, token_suffix)
    assert prompts.shape == (n_cls, 4, 1 + n_ctx + l_suf, ctx_dim), prompts.shape
    assert jnp.allclose(prompts, ref, atol=1e-6, rtol=1e-6)

    print("KERNEL_OK")
</pallas_src>

<mosaic_0001>
module attributes {stable_mosaic.version = 11 : i64} {
  func.func @_prompt_kernel(%arg0: i32, %arg1: memref<4x8x128xf32, #tpu.memory_space<vmem>>, %arg2: memref<4x8x128xf32, #tpu.memory_space<vmem>>, %arg3: memref<8x128xf32, #tpu.memory_space<vmem>>, %arg4: memref<8x7x128xf32, #tpu.memory_space<vmem>>, %arg5: memref<8x4x16x128xf32, #tpu.memory_space<vmem>>) attributes {dimension_semantics = [#tpu.dimension_semantics<parallel>], iteration_bounds = array<i64: 1>, scalar_prefetch = 0 : i64, scratch_operands = 0 : i64, tpu.core_type = #tpu.core_type<tc>, window_params = [{pipeline_mode = #tpu.pipeline_mode<synchronous>, transform_indices = @transform_0, window_bounds = array<i64: 4, 8, 128>}, {pipeline_mode = #tpu.pipeline_mode<synchronous>, transform_indices = @transform_1, window_bounds = array<i64: 4, 8, 128>}, {transform_indices = @transform_2, window_bounds = array<i64: 8, 128>}, {transform_indices = @transform_3, window_bounds = array<i64: 8, 7, 128>}, {transform_indices = @transform_4, window_bounds = array<i64: 8, 4, 16, 128>}]} {
    %c0 = arith.constant 0 : index
    %c0_0 = arith.constant 0 : index
    %c0_1 = arith.constant 0 : index
    %0 = vector.load %arg1[%c0, %c0_0, %c0_1] : memref<4x8x128xf32, #tpu.memory_space<vmem>>, vector<4x8x128xf32>
    %c0_2 = arith.constant 0 : index
    %c0_3 = arith.constant 0 : index
    %c0_4 = arith.constant 0 : index
    %1 = vector.load %arg2[%c0_2, %c0_3, %c0_4] : memref<4x8x128xf32, #tpu.memory_space<vmem>>, vector<4x8x128xf32>
    %2 = arith.addf %0, %1 : vector<4x8x128xf32>
    %c0_5 = arith.constant 0 : index
    %c0_6 = arith.constant 0 : index
    %3 = vector.load %arg3[%c0_5, %c0_6] : memref<8x128xf32, #tpu.memory_space<vmem>>, vector<8x128xf32>
    %4 = vector.shape_cast %3 : vector<8x128xf32> to vector<8x1x1x128xf32>
    %5 = vector.shape_cast %4 : vector<8x1x1x128xf32> to vector<8x1x1x128xf32>
    %6 = vector.broadcast %5 : vector<8x1x1x128xf32> to vector<8x4x1x128xf32>
    %c0_7 = arith.constant 0 : index
    %c0_8 = arith.constant 0 : index
    %c0_9 = arith.constant 0 : index
    %c0_10 = arith.constant 0 : index
    %7 = vector.load %arg5[%c0_7, %c0_8, %c0_9, %c0_10] : memref<8x4x16x128xf32, #tpu.memory_space<vmem>>, vector<8x4x1x128xf32>
    tpu.vector_store %arg5[%c0_7, %c0_8, %c0_9, %c0_10], %6 {strides = array<i32>} : memref<8x4x16x128xf32, #tpu.memory_space<vmem>>, vector<8x4x1x128xf32>,
    %8 = vector.shape_cast %2 : vector<4x8x128xf32> to vector<1x4x8x128xf32>
    %9 = vector.shape_cast %8 : vector<1x4x8x128xf32> to vector<1x4x8x128xf32>
    %10 = vector.broadcast %9 : vector<1x4x8x128xf32> to vector<8x4x8x128xf32>
    %c0_11 = arith.constant 0 : index
    %c0_12 = arith.constant 0 : index
    %c1 = arith.constant 1 : index
    %c0_13 = arith.constant 0 : index
    %11 = vector.load %arg5[%c0_11, %c0_12, %c1, %c0_13] : memref<8x4x16x128xf32, #tpu.memory_space<vmem>>, vector<8x4x8x128xf32>
    tpu.vector_store %arg5[%c0_11, %c0_12, %c1, %c0_13], %10 {strides = array<i32>} : memref<8x4x16x128xf32, #tpu.memory_space<vmem>>, vector<8x4x8x128xf32>,
    %c0_14 = arith.constant 0 : index
    %c0_15 = arith.constant 0 : index
    %c0_16 = arith.constant 0 : index
    %12 = vector.load %arg4[%c0_14, %c0_15, %c0_16] : memref<8x7x128xf32, #tpu.memory_space<vmem>>, vector<8x7x128xf32>
    %13 = vector.shape_cast %12 : vector<8x7x128xf32> to vector<8x1x7x128xf32>
    %14 = vector.shape_cast %13 : vector<8x1x7x128xf32> to vector<8x1x7x128xf32>
    %15 = vector.broadcast %14 : vector<8x1x7x128xf32> to vector<8x4x7x128xf32>
    %c0_17 = arith.constant 0 : index
    %c0_18 = arith.constant 0 : index
    %c9 = arith.constant 9 : index
    %c0_19 = arith.constant 0 : index
    %16 = vector.load %arg5[%c0_17, %c0_18, %c9, %c0_19] : memref<8x4x16x128xf32, #tpu.memory_space<vmem>>, vector<8x4x7x128xf32>
    tpu.vector_store %arg5[%c0_17, %c0_18, %c9, %c0_19], %15 {strides = array<i32>} : memref<8x4x16x128xf32, #tpu.memory_space<vmem>>, vector<8x4x7x128xf32>,
    return
  }
  func.func @transform_0(%arg0: i32) -> (i32, i32, i32) {
    %c0_i32 = arith.constant 0 : i32
    %c0_i32_0 = arith.constant 0 : i32
    %c0_i32_1 = arith.constant 0 : i32
    %c0_i32_2 = arith.constant 0 : i32
    return %c0_i32, %c0_i32_0, %c0_i32_1 : i32, i32, i32
  }
  func.func @transform_1(%arg0: i32) -> (i32, i32, i32) {
    %c0_i32 = arith.constant 0 : i32
    %c0_i32_0 = arith.constant 0 : i32
    %c0_i32_1 = arith.constant 0 : i32
    %c0_i32_2 = arith.constant 0 : i32
    return %c0_i32, %c0_i32_0, %c0_i32_1 : i32, i32, i32
  }
  func.func @transform_2(%arg0: i32) -> (i32, i32) {
    %c0_i32 = arith.constant 0 : i32
    %c0_i32_0 = arith.constant 0 : i32
    return %arg0, %c0_i32 : i32, i32
  }
  func.func @transform_3(%arg0: i32) -> (i32, i32, i32) {
    %c0_i32 = arith.constant 0 : i32
    %c0_i32_0 = arith.constant 0 : i32
    %c0_i32_1 = arith.constant 0 : i32
    return %arg0, %c0_i32, %c0_i32_0 : i32, i32, i32
  }
  func.func @transform_4(%arg0: i32) -> (i32, i32, i32, i32) {
    %c0_i32 = arith.constant 0 : i32
    %c0_i32_0 = arith.constant 0 : i32
    %c0_i32_1 = arith.constant 0 : i32
    %c0_i32_2 = arith.constant 0 : i32
    return %arg0, %c0_i32, %c0_i32_0, %c0_i32_1 : i32, i32, i32, i32
  }
}

</mosaic_0001>

<bundles_post_ra>
// kernel: tpu_custom_call.1
= control target key start
LH: loop header
LB: loop body
LE: loop exit
PB: predicated region body
PF: predicated region fallthrough
CT: control target
= control target key end

     0   :  { %v36_v1 = vlaneseq  ;;  %v251_v4 = vmov 1966171168   ;;  %s350_s0 = inlined_call_operand.vmem [shape: f32[4,8,128], index: 0, kind: input, shape index: {}]   ;;  %s351_s1 = inlined_call_operand.vmem [shape: f32[4,8,128], index: 1, kind: input, shape index: {}]   ;;  %s352_s2 = inlined_call_operand.vmem [shape: f32[8,128], index: 2, kind: input, shape index: {}]   ;;  %s353_s3 = inlined_call_operand.vmem [shape: f32[8,7,128], index: 3, kind: input, shape index: {}]   ;;  %s354_s4 = inlined_call_operand.hbm [shape: f32[8,4,16,128], index: 4, kind: output, shape index: {}]  }
   0x1   :  { %v283_v0 = vld [vmem:[%s352_s2] sm:$0xff]  ;;  %v34_v5 = vunpack.c.l.s4 %v251_v4  ;;  %v19_v7 = vld [vmem:[%s350_s0 + $0x8] sm:$0xff]  ;;  %v20_v9 = vld [vmem:[%s350_s0 + $0x10] sm:$0xff] }
   0x2   :  { %v18_v2 = vld [vmem:[%s350_s0] sm:$0xff]  ;;  %v23_v8 = vld [vmem:[%s351_s1 + $0x8] sm:$0xff]  ;;  %v37_v10 = vshrl.u32 %v36_v1, 7  ;;  %v24_v12 = vld [vmem:[%s351_s1 + $0x10] sm:$0xff]  ;;  %v32_v16 = vcombine.high %v283_v0, %v283_v0 }
   0x3   :  { %v22_v3 = vld [vmem:[%s351_s1] sm:$0xff]  ;;  %v27_v11 = vadd.f32 %v23_v8, %v19_v7  ;;  %v21_v13 = vld [vmem:[%s350_s0 + $0x18] sm:$0xff]  ;;  %v35_v15 = vunpack.c.0.s8 %v34_v5  ;;  %v28_v17 = vadd.f32 %v24_v12, %v20_v9  ;;  %v154_v20 = vld [vmem:[%s353_s3 + $0x8] sm:$0x7f] }
   0x4   :  { %v26_v6 = vadd.f32 %v22_v3, %v18_v2  ;;  %v25_v14 = vld [vmem:[%s351_s1 + $0x18] sm:$0xff]  ;;  %v153_v19 = vld [vmem:[%s353_s3] sm:$0x7f]  ;;  %v155_v21 = vld [vmem:[%s353_s3 + $0x10] sm:$0x7f] }
   0x5   :  { %v29_v18 = vadd.f32 %v25_v14, %v21_v13  ;;  %122 = vst [vmem:[#allocation2 + $0x11] sm:$0xff] %v27_v11  ;;  %126 = vst [vmem:[#allocation2 + $0x51] sm:$0xff] %v27_v11  ;;  %v156_v22 = vld [vmem:[%s353_s3 + $0x18] sm:$0x7f]  ;;  %v157_v23 = vld [vmem:[%s353_s3 + $0x20] sm:$0x7f]  ;;  %v329_v25 = vsub.s32 %v35_v15, %v37_v10 }
   0x6   :  { %121 = vst [vmem:[#allocation2 + $0x1] sm:$0xff] %v26_v6  ;;  %125 = vst [vmem:[#allocation2 + $0x41] sm:$0xff] %v26_v6  ;;  %v158_v24 = vld [vmem:[%s353_s3 + $0x28] sm:$0x7f]  ;;  %v159_v26 = vld [vmem:[%s353_s3 + $0x30] sm:$0x7f] }
   0x7   :  { %129 = vst [vmem:[#allocation2 + $0x81] sm:$0xff] %v26_v6  ;;  %133 = vst [vmem:[#allocation2 + $0xc1] sm:$0xff] %v26_v6  ;;  %v160_v27 = vld [vmem:[%s353_s3 + $0x38] sm:$0x7f] }
   0x8   :  { %137 = vst [vmem:[#allocation2 + $0x101] sm:$0xff] %v26_v6  ;;  %141 = vst [vmem:[#allocation2 + $0x141] sm:$0xff] %v26_v6 }
   0x9   :  { %145 = vst [vmem:[#allocation2 + $0x181] sm:$0xff] %v26_v6  ;;  %149 = vst [vmem:[#allocation2 + $0x1c1] sm:$0xff] %v26_v6 }
   0xa   :  { %130 = vst [vmem:[#allocation2 + $0x91] sm:$0xff] %v27_v11  ;;  %134 = vst [vmem:[#allocation2 + $0xd1] sm:$0xff] %v27_v11 }
   0xb   :  { %138 = vst [vmem:[#allocation2 + $0x111] sm:$0xff] %v27_v11  ;;  %142 = vst [vmem:[#allocation2 + $0x151] sm:$0xff] %v27_v11 }
   0xc   :  { %146 = vst [vmem:[#allocation2 + $0x191] sm:$0xff] %v27_v11  ;;  %150 = vst [vmem:[#allocation2 + $0x1d1] sm:$0xff] %v27_v11 }
   0xd   :  { %161 = vst [vmem:[#allocation2 + $0x9] sm:$0x7f] %v153_v19  ;;  %162 = vst [vmem:[#allocation2 + $0x19] sm:$0x7f] %v153_v19 }
   0xe   :  { %163 = vst [vmem:[#allocation2 + $0x29] sm:$0x7f] %v153_v19  ;;  %164 = vst [vmem:[#allocation2 + $0x39] sm:$0x7f] %v153_v19 }
   0xf   :  { %165 = vst [vmem:[#allocation2 + $0x49] sm:$0x7f] %v154_v20  ;;  %166 = vst [vmem:[#allocation2 + $0x59] sm:$0x7f] %v154_v20 }
  0x10   :  { %167 = vst [vmem:[#allocation2 + $0x69] sm:$0x7f] %v154_v20  ;;  %168 = vst [vmem:[#allocation2 + $0x79] sm:$0x7f] %v154_v20 }
  0x11   :  { %169 = vst [vmem:[#allocation2 + $0x89] sm:$0x7f] %v155_v21  ;;  %170 = vst [vmem:[#allocation2 + $0x99] sm:$0x7f] %v155_v21 }
  0x12   :  { %171 = vst [vmem:[#allocation2 + $0xa9] sm:$0x7f] %v155_v21  ;;  %172 = vst [vmem:[#allocation2 + $0xb9] sm:$0x7f] %v155_v21 }
  0x13   :  { %123 = vst [vmem:[#allocation2 + $0x21] sm:$0xff] %v28_v17  ;;  %127 = vst [vmem:[#allocation2 + $0x61] sm:$0xff] %v28_v17 }
  0x14   :  { %131 = vst [vmem:[#allocation2 + $0xa1] sm:$0xff] %v28_v17  ;;  %135 = vst [vmem:[#allocation2 + $0xe1] sm:$0xff] %v28_v17 }
  0x15   :  { %139 = vst [vmem:[#allocation2 + $0x121] sm:$0xff] %v28_v17  ;;  %143 = vst [vmem:[#allocation2 + $0x161] sm:$0xff] %v28_v17 }
  0x16   :  { %147 = vst [vmem:[#allocation2 + $0x1a1] sm:$0xff] %v28_v17  ;;  %151 = vst [vmem:[#allocation2 + $0x1e1] sm:$0xff] %v28_v17 }
  0x17   :  { %124 = vst [vmem:[#allocation2 + $0x31] sm:$0xff] %v29_v18  ;;  %128 = vst [vmem:[#allocation2 + $0x71] sm:$0xff] %v29_v18 }
  0x18   :  { %132 = vst [vmem:[#allocation2 + $0xb1] sm:$0xff] %v29_v18  ;;  %136 = vst [vmem:[#allocation2 + $0xf1] sm:$0xff] %v29_v18 }
  0x19   :  { %140 = vst [vmem:[#allocation2 + $0x131] sm:$0xff] %v29_v18  ;;  %144 = vst [vmem:[#allocation2 + $0x171] sm:$0xff] %v29_v18 }
  0x1a   :  { %148 = vst [vmem:[#allocation2 + $0x1b1] sm:$0xff] %v29_v18  ;;  %152 = vst [vmem:[#allocation2 + $0x1f1] sm:$0xff] %v29_v18 }
  0x1b   :  { %173 = vst [vmem:[#allocation2 + $0xc9] sm:$0x7f] %v156_v22  ;;  %174 = vst [vmem:[#allocation2 + $0xd9] sm:$0x7f] %v156_v22 }
  0x1c   :  { %175 = vst [vmem:[#allocation2 + $0xe9] sm:$0x7f] %v156_v22  ;;  %176 = vst [vmem:[#allocation2 + $0xf9] sm:$0x7f] %v156_v22 }
  0x1d   :  { %177 = vst [vmem:[#allocation2 + $0x109] sm:$0x7f] %v157_v23  ;;  %178 = vst [vmem:[#allocation2 + $0x119] sm:$0x7f] %v157_v23 }
  0x1e   :  { %179 = vst [vmem:[#allocation2 + $0x129] sm:$0x7f] %v157_v23  ;;  %180 = vst [vmem:[#allocation2 + $0x139] sm:$0x7f] %v157_v23 }
  0x1f   :  { %181 = vst [vmem:[#allocation2 + $0x149] sm:$0x7f] %v158_v24  ;;  %182 = vst [vmem:[#allocation2 + $0x159] sm:$0x7f] %v158_v24 }
  0x20   :  { %183 = vst [vmem:[#allocation2 + $0x169] sm:$0x7f] %v158_v24  ;;  %184 = vst [vmem:[#allocation2 + $0x179] sm:$0x7f] %v158_v24 }
  0x21   :  { %9 = vsyncpa [#allocation3], 0  ;;  %185 = vst [vmem:[#allocation2 + $0x189] sm:$0x7f] %v159_v26  ;;  %v39_v28 = vrot.slane %v283_v0, %v329_v25  ;;  %v46_v29 = vrot.slane %v32_v16, %v329_v25  ;;  %s252_s3 = smov [#allocation2]  }
  0x22   :  { %186 = vst [vmem:[#allocation2 + $0x199] sm:$0x7f] %v159_v26  ;;  %187 = vst [vmem:[#allocation2 + $0x1a9] sm:$0x7f] %v159_v26  ;;  %s198_s20 = sshll.u32 %s252_s3, 4  ;;  %s199_s20 = int_to_ptr.vmem [resolvable:$true] %s198_s20 }
  0x23   :  { %188 = vst [vmem:[#allocation2 + $0x1b9] sm:$0x7f] %v159_v26  ;;  %189 = vst [vmem:[#allocation2 + $0x1c9] sm:$0x7f] %v160_v27  ;;  %v47_v30 = vcombine.high %v39_v28, %v39_v28  ;;  %v55_v31 = vrot.slane %v39_v28, %v329_v25  ;;  %v48_v32 = vcombine.high %v46_v29, %v46_v29  ;;  %s229_s21 = scalar_lea.vmem %s199_s20, 8192  ;;  %p234_p1 = scmp.lt.s32.totalorder %s199_s20, %s199_s20 }
  0x24   :  { %190 = vst [vmem:[#allocation2 + $0x1d9] sm:$0x7f] %v160_v27  ;;  %191 = vst [vmem:[#allocation2 + $0x1e9] sm:$0x7f] %v160_v27  ;;  %v62_v33 = vrot.slane %v46_v29, %v329_v25  ;;  %p230_p0 = scmp.ne.s32.totalorder %s199_s20, %s229_s21  ;;  %p235_p2 = scmp.lt.s32.totalorder %s229_s21, %s229_s21 }
  0x25   :  { %192 = vst [vmem:[#allocation2 + $0x1f9] sm:$0x7f] %v160_v27  ;;  %209 = vst.sshfl [vmem:[#allocation2] sm:$0x1 pattern:$0x73625140] %v39_v28  ;;  %v77_v34 = vcombine.high %v55_v31, %v55_v31  ;;  %v69_v35 = vrot.slane %v47_v30, %v329_v25  ;;  %v76_v37 = vrot.slane %v48_v32, %v329_v25 }
  0x26   :  { %210 = vst.sshfl [vmem:[#allocation2 + $0x10] sm:$0x1 pattern:$0x73625140] %v39_v28  ;;  %v78_v36 = vcombine.high %v62_v33, %v62_v33  ;;  %p236_p3 = por %p235_p2, %p234_p1 }
  0x27   :  { %211 = vst.sshfl [vmem:[#allocation2 + $0x20] sm:$0x1 pattern:$0x73625140] %v39_v28  ;;  %97 = vst [vmem:[#allocation2 + $0x80] sm:$0x1] %v77_v34  ;;  %v79_v38 = vcombine.high %v69_v35, %v69_v35  ;;  %v80_v39 = vcombine.high %v76_v37, %v76_v37 }
  0x28   :  { %212 = vst.sshfl [vmem:[#allocation2 + $0x30] sm:$0x1 pattern:$0x73625140] %v39_v28  ;;  %98 = vst [vmem:[#allocation2 + $0x90] sm:$0x1] %v77_v34  ;;  %p237_p4 = pnand %p236_p3, %p230_p0 }
  0x29   :  { %217 = vst.sshfl [vmem:[#allocation2 + $0x100] sm:$0x1 pattern:$0x73625140] %v46_v29  ;;  %99 = vst [vmem:[#allocation2 + $0xa0] sm:$0x1] %v77_v34 }
  0x2a   :  { %218 = vst.sshfl [vmem:[#allocation2 + $0x110] sm:$0x1 pattern:$0x73625140] %v46_v29  ;;  %100 = vst [vmem:[#allocation2 + $0xb0] sm:$0x1] %v77_v34 }
  0x2b   :  { %219 = vst.sshfl [vmem:[#allocation2 + $0x120] sm:$0x1 pattern:$0x73625140] %v46_v29  ;;  %113 = vst [vmem:[#allocation2 + $0x180] sm:$0x1] %v78_v36 }
  0x2c   :  { %220 = vst.sshfl [vmem:[#allocation2 + $0x130] sm:$0x1 pattern:$0x73625140] %v46_v29  ;;  %114 = vst [vmem:[#allocation2 + $0x190] sm:$0x1] %v78_v36 }
  0x2d   :  { %213 = vst.sshfl [vmem:[#allocation2 + $0x40] sm:$0x1 pattern:$0x73625140] %v47_v30  ;;  %115 = vst [vmem:[#allocation2 + $0x1a0] sm:$0x1] %v78_v36 }
  0x2e   :  { %214 = vst.sshfl [vmem:[#allocation2 + $0x50] sm:$0x1 pattern:$0x73625140] %v47_v30  ;;  %116 = vst [vmem:[#allocation2 + $0x1b0] sm:$0x1] %v78_v36 }
  0x2f   :  { %215 = vst.sshfl [vmem:[#allocation2 + $0x60] sm:$0x1 pattern:$0x73625140] %v47_v30  ;;  %101 = vst [vmem:[#allocation2 + $0xc0] sm:$0x1] %v79_v38 }
  0x30   :  { %216 = vst.sshfl [vmem:[#allocation2 + $0x70] sm:$0x1 pattern:$0x73625140] %v47_v30  ;;  %102 = vst [vmem:[#allocation2 + $0xd0] sm:$0x1] %v79_v38 }
  0x31   :  { %221 = vst.sshfl [vmem:[#allocation2 + $0x140] sm:$0x1 pattern:$0x73625140] %v48_v32  ;;  %103 = vst [vmem:[#allocation2 + $0xe0] sm:$0x1] %v79_v38 }
  0x32   :  { %222 = vst.sshfl [vmem:[#allocation2 + $0x150] sm:$0x1 pattern:$0x73625140] %v48_v32  ;;  %104 = vst [vmem:[#allocation2 + $0xf0] sm:$0x1] %v79_v38 }
  0x33   :  { %223 = vst.sshfl [vmem:[#allocation2 + $0x160] sm:$0x1 pattern:$0x73625140] %v48_v32  ;;  %117 = vst [vmem:[#allocation2 + $0x1c0] sm:$0x1] %v80_v39 }
  0x34   :  { %224 = vst.sshfl [vmem:[#allocation2 + $0x170] sm:$0x1 pattern:$0x73625140] %v48_v32  ;;  %118 = vst [vmem:[#allocation2 + $0x1d0] sm:$0x1] %v80_v39 }
  0x35   :  { %119 = vst [vmem:[#allocation2 + $0x1e0] sm:$0x1] %v80_v39  ;;  %120 = vst [vmem:[#allocation2 + $0x1f0] sm:$0x1] %v80_v39 }
  0x36   :  { %240 = shalt.err (!%p237_p4)
}
  0x37   :  { %s253_s22 = smov 128   ;;  %s254_s23 = smov 8  }
  0x38   :  { %204 = dma.vmem_to_hbm [thread:$0]  %s199_s20, 8192, %s354_s4, [#allocation3], %s253_s22, %s253_s22, %s254_s23  }
  0x39   :  { %249 = dma.done.wait [#allocation3], 8192  }
  0x3a   :  { %250 = vsyncadd [#allocation3], 4294959104 }
  0x3b   :  { %208 = vsyncpa [#allocation3], 1 }

</bundles_post_ra>
